<compile_context>
chip_gen: v7x
topology: tpu7x:2x2x1
jax: 0.10.0
libtpu: 0.0.40
codegen_flags: <defaults>
</compile_context>

<pallas_src>
import numpy as np
import jax
import jax.numpy as jnp
from jax import lax
from jax.experimental import pallas as pl
from jax.experimental.pallas import tpu as pltpu

# ----------------------------- static problem geometry -----------------------------
N_BATCH = 2
C_IN = 3                    # real input channels (cat doubles to 6, folded into weights)
H = W = 16
KH = KW = 5
OC1, OC1P = 10, 16          # conv1 out channels, padded per-ow channel slot
OC2, OC2P = 20, 32          # conv2 out channels, padded channel slot
OH1 = OW1 = H - KH + 1      # 12
PH1 = PW1 = OH1 // 2        # 6
OH2 = OW2 = PH1 - KH + 1    # 2
HALF1 = 128                 # even-ow conv1 results in lanes [0,128), odd-ow in [128,256)
LANES1 = 2 * HALF1          # conv1 output lane width (256)
P1_LANES = HALF1            # pooled-1 lane width (128), lane = 16*j + c
LANES2 = OW2 * OC2P         # conv2 output lane width (64), lane = ow2*32 + oc2
IN_LANES = W * C_IN         # 48, lane = w*3 + c
K1 = KH * IN_LANES          # 240  fused conv1 contraction depth
K2 = KH * P1_LANES          # 640  fused conv2 contraction depth


# --------------------------------- fused kernel ------------------------------------
def _fused_kernel(x_ref, w1t_ref, b1_ref, w2t_ref, b2_ref, o_ref):
    # x_ref:   (m*H, IN_LANES)   m images stacked along rows; row = i*16 + h, lane = w*3+c
    # w1t_ref: (K1, LANES1)      bf16 Toeplitz-packed conv1 weights (kh folded into rows)
    # b1_ref:  (1, LANES1)       f32
    # w2t_ref: (K2, LANES2)      bf16
    # b2_ref:  (1, LANES2)       f32
    # o_ref:   (1, 1, m*OC2P)    lane-packed result, lane = i*32 + oc
    m = x_ref.shape[0] // H          # images handled by this grid step (static)
    R = m * H

    # tanh of the (cat-folded) input; elementwise math stays in f32.
    tx = jnp.tanh(x_ref[...])                                           # (R, 48)

    # ---- conv1 (+bias+ReLU): ONE K=240 matmul over an in-register im2row ----------
    # rows1[r, kh*48 + l] = tx[r + kh, l]; rows r = i*16 + oh (oh < 12) are valid,
    # the few trailing rows per image are harmless garbage that never crosses HBM.
    L1 = R - (KH - 1)
    rows1 = jnp.concatenate([tx[kh:kh + L1, :] for kh in range(KH)], axis=-1)
    a1 = jnp.dot(rows1.astype(jnp.bfloat16), w1t_ref[...],
                 preferred_element_type=jnp.float32)
    a1 = jnp.maximum(a1 + b1_ref[...], 0.0)                             # (L1, 256)

    # ---- MaxPool 2x2 #1, on registers (un-decimated: valid rows at i*16 + 2*t) ----
    hp = jnp.maximum(a1[:L1 - 1, :], a1[1:, :])                         # (L1-1, 256) rows
    p1 = jnp.maximum(hp[:, :HALF1], hp[:, HALF1:])                      # (L1-1, 128) width

    # ---- conv2 (+bias+ReLU): ONE K=640 matmul -------------------------------------
    # rows2[r, kh*128 + l] = p1[r + 2*kh, l]; valid at r = i*16 + 2*oh2, oh2 in {0,1}.
    L2 = (L1 - 1) - 2 * (KH - 1)
    rows2 = jnp.concatenate([p1[2 * kh:2 * kh + L2, :] for kh in range(KH)], axis=-1)
    a2 = jnp.dot(rows2.astype(jnp.bfloat16), w2t_ref[...],
                 preferred_element_type=jnp.float32)
    a2 = jnp.maximum(a2 + b2_ref[...], 0.0)                             # (L2, 64)

    # ---- MaxPool 2x2 (2x2 -> 1x1) + trailing ReLU; single lane-dense store --------
    outs = []
    for i in range(m):                                                  # static unroll
        r = i * H
        mr = jnp.maximum(a2[r:r + 1, :], a2[r + 2:r + 3, :])            # pool over oh2
        yi = jnp.maximum(mr[:, :OC2P], mr[:, OC2P:])                    # pool over ow2
        outs.append(jnp.maximum(yi, 0.0))                               # trailing ReLU
    o_ref[0] = jnp.concatenate(outs, axis=-1)                           # (1, m*32)


def _fused_forward(x2d, w1t, b1row, w2t, b2row, num_steps):
    m = x2d.shape[0] // (num_steps * H)
    return pl.pallas_call(
        _fused_kernel,
        out_shape=jax.ShapeDtypeStruct((num_steps, 1, m * OC2P), jnp.float32),
        grid_spec=pltpu.PrefetchScalarGridSpec(
            num_scalar_prefetch=0,
            grid=(num_steps,),
            in_specs=[
                pl.BlockSpec((m * H, IN_LANES), lambda b: (b, 0)),
                pl.BlockSpec((K1, LANES1), lambda b: (0, 0)),
                pl.BlockSpec((1, LANES1), lambda b: (0, 0)),
                pl.BlockSpec((K2, LANES2), lambda b: (0, 0)),
                pl.BlockSpec((1, LANES2), lambda b: (0, 0)),
            ],
            out_specs=pl.BlockSpec((1, 1, m * OC2P), lambda b: (b, 0, 0)),
        ),
        compiler_params=pltpu.CompilerParams(dimension_semantics=("parallel",)),
    )(x2d, w1t, b1row, w2t, b2row)


def _num_grid_steps(n):
    """1 step on single-TensorCore chips (v5e/v6e); 2 parallel steps on v7x (2 TCs)."""
    if n <= 1:
        return 1
    try:
        kind = jax.devices()[0].device_kind.lower()
    except Exception:
        kind = ""
    return 2 if "v7" in kind else 1


# ------------------------------ weight packing (once) ------------------------------
def pack_params(params):
    """Pack conv weights into fused Toeplitz matrices (host side, once); weights bf16."""
    w1, b1, w2, b2 = (np.asarray(p, dtype=np.float32) for p in params)
    # fold cat([x, x], 1) into conv1: conv(cat(y,y), w1) == conv(y, w1[:, :3] + w1[:, 3:])
    w1f = w1[:, :C_IN] + w1[:, C_IN:]                         # (10, 3, 5, 5)

    w1t = np.zeros((K1, LANES1), np.float32)
    b1row = np.zeros((1, LANES1), np.float32)
    for ow in range(OW1):
        base = (ow % 2) * HALF1 + (ow // 2) * OC1P            # even/odd ow in separate halves
        b1row[0, base:base + OC1] = b1
        for kh in range(KH):
            for kw in range(KW):
                r0 = kh * IN_LANES + (ow + kw) * C_IN
                w1t[r0:r0 + C_IN, base:base + OC1] = w1f[:, :, kh, kw].T

    w2t = np.zeros((K2, LANES2), np.float32)
    b2row = np.zeros((1, LANES2), np.float32)
    for ow2 in range(OW2):
        base = ow2 * OC2P
        b2row[0, base:base + OC2] = b2
        for kh in range(KH):
            for kw in range(KW):
                r0 = kh * P1_LANES + (ow2 + kw) * OC1P        # pooled-width index j = ow2+kw
                w2t[r0:r0 + OC1, base:base + OC2] = w2[:, :, kh, kw].T

    return (jnp.asarray(w1t, jnp.bfloat16), jnp.asarray(b1row, jnp.float32),
            jnp.asarray(w2t, jnp.bfloat16), jnp.asarray(b2row, jnp.float32))


def init_params(key, dtype=jnp.float32):
    k1, k2, k3, k4 = jax.random.split(key, 4)
    fan1 = 6 * KH * KW
    w1 = jax.random.uniform(k1, (OC1, 6, KH, KW), dtype, -1.0, 1.0) / jnp.sqrt(fan1)
    b1 = jax.random.uniform(k2, (OC1,), dtype, -1.0, 1.0) / jnp.sqrt(fan1)
    fan2 = OC1 * KH * KW
    w2 = jax.random.uniform(k3, (OC2, OC1, KH, KW), dtype, -1.0, 1.0) / jnp.sqrt(fan2)
    b2 = jax.random.uniform(k4, (OC2,), dtype, -1.0, 1.0) / jnp.sqrt(fan2)
    return (w1, b1, w2, b2)


# --------------------------------- forward wrapper ----------------------------------
@jax.jit
def model_forward(x, packed):
    w1t, b1row, w2t, b2row = packed
    n = x.shape[0]
    num_steps = _num_grid_steps(n)
    m = -(-n // num_steps)                 # images per step (ceil)
    n_pad = num_steps * m
    # NCHW -> rows = (image, h), lanes = w*3 + c (tiny one-time layout glue)
    xp = jnp.transpose(x, (0, 2, 3, 1)).reshape(n, H, IN_LANES).astype(jnp.float32)
    if n_pad != n:
        xp = jnp.pad(xp, ((0, n_pad - n), (0, 0), (0, 0)))
    x2d = xp.reshape(n_pad * H, IN_LANES)
    y = _fused_forward(x2d, w1t, b1row, w2t, b2row, num_steps)   # (steps, 1, m*32)
    y = y.reshape(n_pad, OC2P)[:n, :OC2]
    return y.reshape(n, OC2, 1, 1)                               # (N, 20, 1, 1)


# ------------------------------- pure-JAX reference ---------------------------------
def _reference_forward(x, params):
    w1, b1, w2, b2 = params

    def conv_relu(h, w, b):
        o = lax.conv_general_dilated(h, w, (1, 1), 'VALID',
                                     dimension_numbers=('NCHW', 'OIHW', 'NCHW'),
                                     precision=lax.Precision.HIGHEST)
        return jnp.maximum(o + b[None, :, None, None], 0.0)

    def pool(h):
        return jnp.maximum(jnp.maximum(h[:, :, 0::2, 0::2], h[:, :, 0::2, 1::2]),
                           jnp.maximum(h[:, :, 1::2, 0::2], h[:, :, 1::2, 1::2]))

    t2 = jnp.tanh(jnp.concatenate([x, x], axis=1))
    h = pool(conv_relu(t2, w1, b1))
    h = pool(conv_relu(h, w2, b2))
    return jnp.maximum(h, 0.0)


if __name__ == "__main__":
    key = jax.random.PRNGKey(0)
    kx, kp = jax.random.split(key)
    x = jax.random.normal(kx, (N_BATCH, C_IN, H, W), dtype=jnp.float32)

    params = init_params(kp)
    packed = pack_params(params)

    y = jax.block_until_ready(model_forward(x, packed))
    assert y.shape == (N_BATCH, OC2, 1, 1), y.shape

    y_ref = jax.block_until_ready(_reference_forward(x, params))
    err = float(jnp.max(jnp.abs(y - y_ref)))
    assert bool(jnp.all(jnp.isfinite(y)))
    # bf16 MXU inputs -> ~1e-2 headroom is expected; f32 path would be ~1e-6
    assert jnp.allclose(y, y_ref, rtol=2e-2, atol=2e-2), f"max abs err = {err}"

    print("KERNEL_OK")
</pallas_src>

<mosaic_0001>
module attributes {stable_mosaic.version = 11 : i64} {
  func.func @_fused_kernel(%arg0: i32, %arg1: memref<32x48xf32, #tpu.memory_space<vmem>>, %arg2: memref<240x256xbf16, #tpu.memory_space<vmem>>, %arg3: memref<1x256xf32, #tpu.memory_space<vmem>>, %arg4: memref<640x64xbf16, #tpu.memory_space<vmem>>, %arg5: memref<1x64xf32, #tpu.memory_space<vmem>>, %arg6: memref<1x1x64xf32, #tpu.memory_space<vmem>>) attributes {dimension_semantics = [#tpu.dimension_semantics<parallel>], iteration_bounds = array<i64: 1>, scalar_prefetch = 0 : i64, scratch_operands = 0 : i64, tpu.core_type = #tpu.core_type<tc>, window_params = [{transform_indices = @transform_0, window_bounds = array<i64: 32, 48>}, {pipeline_mode = #tpu.pipeline_mode<synchronous>, transform_indices = @transform_1, window_bounds = array<i64: 240, 256>}, {pipeline_mode = #tpu.pipeline_mode<synchronous>, transform_indices = @transform_2, window_bounds = array<i64: 1, 256>}, {pipeline_mode = #tpu.pipeline_mode<synchronous>, transform_indices = @transform_3, window_bounds = array<i64: 640, 64>}, {pipeline_mode = #tpu.pipeline_mode<synchronous>, transform_indices = @transform_4, window_bounds = array<i64: 1, 64>}, {transform_indices = @transform_5, window_bounds = array<i64: 1, 1, 64>}]} {
    %c0 = arith.constant 0 : index
    %c0_0 = arith.constant 0 : index
    %0 = vector.load %arg1[%c0, %c0_0] : memref<32x48xf32, #tpu.memory_space<vmem>>, vector<32x48xf32>
    %1 = math.tanh %0 : vector<32x48xf32>
    %2 = vector.extract_strided_slice %1 {offsets = [0, 0], sizes = [28, 48], strides = [1, 1]} : vector<32x48xf32> to vector<28x48xf32>
    %3 = vector.extract_strided_slice %1 {offsets = [1, 0], sizes = [28, 48], strides = [1, 1]} : vector<32x48xf32> to vector<28x48xf32>
    %4 = vector.extract_strided_slice %1 {offsets = [2, 0], sizes = [28, 48], strides = [1, 1]} : vector<32x48xf32> to vector<28x48xf32>
    %5 = vector.extract_strided_slice %1 {offsets = [3, 0], sizes = [28, 48], strides = [1, 1]} : vector<32x48xf32> to vector<28x48xf32>
    %6 = vector.extract_strided_slice %1 {offsets = [4, 0], sizes = [28, 48], strides = [1, 1]} : vector<32x48xf32> to vector<28x48xf32>
    %7 = tpu.concatenate %2, %3, %4, %5, %6 in 1 : vector<28x48xf32>, vector<28x48xf32>, vector<28x48xf32>, vector<28x48xf32>, vector<28x48xf32> -> vector<28x240xf32>
    %8 = arith.truncf %7 : vector<28x240xf32> to vector<28x240xbf16>
    %c0_1 = arith.constant 0 : index
    %c0_2 = arith.constant 0 : index
    %9 = vector.load %arg2[%c0_1, %c0_2] : memref<240x256xbf16, #tpu.memory_space<vmem>>, vector<240x256xbf16>
    %cst = arith.constant dense<0.000000e+00> : vector<28x256xf32>
    %10 = tpu.matmul %8, %9, %cst {dimension_numbers = #tpu.dot_dimension_numbers<[1], [0], [0], [1], [0, 0, 1, 1], [], []>} : vector<28x240xbf16>, vector<240x256xbf16>, vector<28x256xf32> -> vector<28x256xf32>
    %c0_3 = arith.constant 0 : index
    %c0_4 = arith.constant 0 : index
    %11 = vector.load %arg3[%c0_3, %c0_4] : memref<1x256xf32, #tpu.memory_space<vmem>>, vector<1x256xf32>
    %12 = vector.broadcast %11 : vector<1x256xf32> to vector<28x256xf32>
    %13 = arith.addf %10, %12 : vector<28x256xf32>
    %cst_5 = arith.constant 0.000000e+00 : f32
    %14 = vector.broadcast %cst_5 : f32 to vector<28x256xf32>
    %15 = arith.maximumf %13, %14 : vector<28x256xf32>
    %16 = vector.extract_strided_slice %15 {offsets = [0, 0], sizes = [27, 256], strides = [1, 1]} : vector<28x256xf32> to vector<27x256xf32>
    %17 = vector.extract_strided_slice %15 {offsets = [1, 0], sizes = [27, 256], strides = [1, 1]} : vector<28x256xf32> to vector<27x256xf32>
    %18 = arith.maximumf %16, %17 : vector<27x256xf32>
    %19 = vector.extract_strided_slice %18 {offsets = [0, 0], sizes = [27, 128], strides = [1, 1]} : vector<27x256xf32> to vector<27x128xf32>
    %20 = vector.extract_strided_slice %18 {offsets = [0, 128], sizes = [27, 128], strides = [1, 1]} : vector<27x256xf32> to vector<27x128xf32>
    %21 = arith.maximumf %19, %20 : vector<27x128xf32>
    %22 = vector.extract_strided_slice %21 {offsets = [0, 0], sizes = [19, 128], strides = [1, 1]} : vector<27x128xf32> to vector<19x128xf32>
    %23 = vector.extract_strided_slice %21 {offsets = [2, 0], sizes = [19, 128], strides = [1, 1]} : vector<27x128xf32> to vector<19x128xf32>
    %24 = vector.extract_strided_slice %21 {offsets = [4, 0], sizes = [19, 128], strides = [1, 1]} : vector<27x128xf32> to vector<19x128xf32>
    %25 = vector.extract_strided_slice %21 {offsets = [6, 0], sizes = [19, 128], strides = [1, 1]} : vector<27x128xf32> to vector<19x128xf32>
    %26 = vector.extract_strided_slice %21 {offsets = [8, 0], sizes = [19, 128], strides = [1, 1]} : vector<27x128xf32> to vector<19x128xf32>
    %27 = tpu.concatenate %22, %23, %24, %25, %26 in 1 : vector<19x128xf32>, vector<19x128xf32>, vector<19x128xf32>, vector<19x128xf32>, vector<19x128xf32> -> vector<19x640xf32>
    %28 = arith.truncf %27 : vector<19x640xf32> to vector<19x640xbf16>
    %c0_6 = arith.constant 0 : index
    %c0_7 = arith.constant 0 : index
    %29 = vector.load %arg4[%c0_6, %c0_7] : memref<640x64xbf16, #tpu.memory_space<vmem>>, vector<640x64xbf16>
    %cst_8 = arith.constant dense<0.000000e+00> : vector<19x64xf32>
    %30 = tpu.matmul %28, %29, %cst_8 {dimension_numbers = #tpu.dot_dimension_numbers<[1], [0], [0], [1], [0, 0, 1, 1], [], []>} : vector<19x640xbf16>, vector<640x64xbf16>, vector<19x64xf32> -> vector<19x64xf32>
    %c0_9 = arith.constant 0 : index
    %c0_10 = arith.constant 0 : index
    %31 = vector.load %arg5[%c0_9, %c0_10] : memref<1x64xf32, #tpu.memory_space<vmem>>, vector<1x64xf32>
    %32 = vector.broadcast %31 : vector<1x64xf32> to vector<19x64xf32>
    %33 = arith.addf %30, %32 : vector<19x64xf32>
    %cst_11 = arith.constant 0.000000e+00 : f32
    %34 = vector.broadcast %cst_11 : f32 to vector<19x64xf32>
    %35 = arith.maximumf %33, %34 : vector<19x64xf32>
    %36 = vector.extract_strided_slice %35 {offsets = [0, 0], sizes = [1, 64], strides = [1, 1]} : vector<19x64xf32> to vector<1x64xf32>
    %37 = vector.extract_strided_slice %35 {offsets = [2, 0], sizes = [1, 64], strides = [1, 1]} : vector<19x64xf32> to vector<1x64xf32>
    %38 = arith.maximumf %36, %37 : vector<1x64xf32>
    %39 = vector.extract_strided_slice %38 {offsets = [0, 0], sizes = [1, 32], strides = [1, 1]} : vector<1x64xf32> to vector<1x32xf32>
    %40 = vector.extract_strided_slice %38 {offsets = [0, 32], sizes = [1, 32], strides = [1, 1]} : vector<1x64xf32> to vector<1x32xf32>
    %41 = arith.maximumf %39, %40 : vector<1x32xf32>
    %cst_12 = arith.constant 0.000000e+00 : f32
    %42 = vector.broadcast %cst_12 : f32 to vector<1x32xf32>
    %43 = arith.maximumf %41, %42 : vector<1x32xf32>
    %44 = vector.extract_strided_slice %35 {offsets = [16, 0], sizes = [1, 64], strides = [1, 1]} : vector<19x64xf32> to vector<1x64xf32>
    %45 = vector.extract_strided_slice %35 {offsets = [18, 0], sizes = [1, 64], strides = [1, 1]} : vector<19x64xf32> to vector<1x64xf32>
    %46 = arith.maximumf %44, %45 : vector<1x64xf32>
    %47 = vector.extract_strided_slice %46 {offsets = [0, 0], sizes = [1, 32], strides = [1, 1]} : vector<1x64xf32> to vector<1x32xf32>
    %48 = vector.extract_strided_slice %46 {offsets = [0, 32], sizes = [1, 32], strides = [1, 1]} : vector<1x64xf32> to vector<1x32xf32>
    %49 = arith.maximumf %47, %48 : vector<1x32xf32>
    %cst_13 = arith.constant 0.000000e+00 : f32
    %50 = vector.broadcast %cst_13 : f32 to vector<1x32xf32>
    %51 = arith.maximumf %49, %50 : vector<1x32xf32>
    %52 = tpu.concatenate %43, %51 in 1 : vector<1x32xf32>, vector<1x32xf32> -> vector<1x64xf32>
    %c0_14 = arith.constant 0 : index
    %c0_15 = arith.constant 0 : index
    %c0_16 = arith.constant 0 : index
    %53 = vector.load %arg6[%c0_14, %c0_15, %c0_16] : memref<1x1x64xf32, #tpu.memory_space<vmem>>, vector<1x1x64xf32>
    %54 = vector.shape_cast %53 : vector<1x1x64xf32> to vector<1x64xf32>
    %55 = vector.shape_cast %52 : vector<1x64xf32> to vector<1x1x64xf32>
    tpu.vector_store %arg6[%c0_14, %c0_15, %c0_16], %55 {strides = array<i32>} : memref<1x1x64xf32, #tpu.memory_space<vmem>>, vector<1x1x64xf32>,
    return
  }
  func.func @transform_0(%arg0: i32) -> (i32, i32) {
    %c0_i32 = arith.constant 0 : i32
    %c0_i32_0 = arith.constant 0 : i32
    return %arg0, %c0_i32 : i32, i32
  }
  func.func @transform_1(%arg0: i32) -> (i32, i32) {
    %c0_i32 = arith.constant 0 : i32
    %c0_i32_0 = arith.constant 0 : i32
    %c0_i32_1 = arith.constant 0 : i32
    return %c0_i32, %c0_i32_0 : i32, i32
  }
  func.func @transform_2(%arg0: i32) -> (i32, i32) {
    %c0_i32 = arith.constant 0 : i32
    %c0_i32_0 = arith.constant 0 : i32
    %c0_i32_1 = arith.constant 0 : i32
    return %c0_i32, %c0_i32_0 : i32, i32
  }
  func.func @transform_3(%arg0: i32) -> (i32, i32) {
    %c0_i32 = arith.constant 0 : i32
    %c0_i32_0 = arith.constant 0 : i32
    %c0_i32_1 = arith.constant 0 : i32
    return %c0_i32, %c0_i32_0 : i32, i32
  }
  func.func @transform_4(%arg0: i32) -> (i32, i32) {
    %c0_i32 = arith.constant 0 : i32
    %c0_i32_0 = arith.constant 0 : i32
    %c0_i32_1 = arith.constant 0 : i32
    return %c0_i32, %c0_i32_0 : i32, i32
  }
  func.func @transform_5(%arg0: i32) -> (i32, i32, i32) {
    %c0_i32 = arith.constant 0 : i32
    %c0_i32_0 = arith.constant 0 : i32
    %c0_i32_1 = arith.constant 0 : i32
    return %arg0, %c0_i32, %c0_i32_0 : i32, i32, i32
  }
}

</mosaic_0001>

<bundles_post_ra>
// kernel: model_forward.1
= control target key start
LH: loop header
LB: loop body
LE: loop exit
PB: predicated region body
PF: predicated region fallthrough
CT: control target
= control target key end

     0   :  { %vm53_vm0 = vcmask 1045504   ;;  %vm33_vm1 = vcmask 1046528   ;;  %vm73_vm2 = vcmask 1044480   ;;  %vm93_vm3 = vcmask 1043456   ;;  %s1279_s22 = smov 96   ;;  %s1280_s23 = smov 48   ;;  %s1622_s0 = inlined_call_operand.vmem [shape: f32[32,48], index: 0, kind: input, shape index: {}]   ;;  %s1623_s1 = inlined_call_operand.vmem [shape: bf16[240,256], index: 1, kind: input, shape index: {}]   ;;  %s1624_s3 = inlined_call_operand.vmem [shape: bf16[640,64], index: 3, kind: input, shape index: {}]   ;;  %s1625_s2 = inlined_call_operand.vmem [shape: f32[1,256], index: 2, kind: input, shape index: {}]   ;;  %s1626_s4 = inlined_call_operand.vmem [shape: f32[1,64], index: 4, kind: input, shape index: {}]   ;;  %s1627_s5 = inlined_call_operand.vmem [shape: f32[1,1,64], index: 5, kind: output, shape index: {}]  }
   0x1   :  { %v21_v0 = vld [vmem:[%s1622_s0] sm:$0xff]  ;;  %v22_v1 = vld [vmem:[%s1622_s0 + $0x8] sm:$0xff]  ;;  %v23_v2 = vld [vmem:[%s1622_s0 + $0x10] sm:$0xff]  ;;  %s1281_s28 = smov 16   ;;  %s1282_s29 = smov 64   ;;  %vm113_vm4 = vcmask 392192  }
   0x2   :  { %1271 = vtanh.f32 %v21_v0  ;;  %v24_v3 = vld [vmem:[%s1622_s0 + $0x18] sm:$0xff]  ;;  %v1186_v4 = vld [vmem:[%s1623_s1 + $0x4] ss:$8 sps:$4 sm:$0xff]   ;;  %v1188_v5 = vld [vmem:[%s1623_s1] ss:$8 sps:$4 sm:$0xff]   ;;  %vm123_vm5 = vcmask 130048  }
   0x3   :  { %1273 = vtanh.f32 %v22_v1  ;;  %v1189_v6 = vld [vmem:[%s1623_s1 + $0x14] ss:$8 sps:$4 sm:$0xff]   ;;  %336 = vmatprep.subr.bf16.mxu0 %v1186_v4  ;;  %v1191_v7 = vld [vmem:[%s1623_s1 + $0x10] ss:$8 sps:$4 sm:$0xff]   ;;  %v1192_v8 = vld [vmem:[%s1623_s1 + $0x24] ss:$8 sps:$4 sm:$0xff]  }
   0x4   :  { %1275 = vtanh.f32 %v23_v2  ;;  %337 = vmatpush1.bf16.msra.mxu0 %v1188_v5  ;;  %v1194_v9 = vld [vmem:[%s1623_s1 + $0x20] ss:$8 sps:$4 sm:$0xff]   ;;  %v1195_v10 = vld [vmem:[%s1623_s1 + $0x34] ss:$8 sps:$4 sm:$0xff]   ;;  %v1197_v22 = vld [vmem:[%s1623_s1 + $0x30] ss:$8 sps:$4 sm:$0xff]  }
   0x5   :  { %1277 = vtanh.f32 %v24_v3  ;;  %338 = vmatprep.subr.bf16.mxu0 %v1189_v6  ;;  %v1198_v27 = vld [vmem:[%s1623_s1 + $0x44] ss:$8 sps:$4 sm:$0xff]   ;;  %v1200_v39 = vld [vmem:[%s1623_s1 + $0x40] ss:$8 sps:$4 sm:$0xff]   ;;  %v1201_v42 = vld [vmem:[%s1623_s1 + $0x54] ss:$8 sps:$4 sm:$0xff]  }
   0x6   :  { %v1203_v49 = vld [vmem:[%s1623_s1 + $0x50] ss:$8 sps:$4 sm:$0xff]   ;;  %v1204_v50 = vld [vmem:[%s1623_s1 + $0x64] ss:$8 sps:$4 sm:$0xff]   ;;  %v1206_v55 = vld [vmem:[%s1623_s1 + $0x60] ss:$8 sps:$4 sm:$0xff]  }
   0x7   :  { %v1207_v56 = vld [vmem:[%s1623_s1 + $0x74] ss:$8 sps:$4 sm:$0xff]   ;;  %v1209_v59 = vld [vmem:[%s1623_s1 + $0x70] ss:$8 sps:$4 sm:$0xff]   ;;  %v1210_v60 = vld [vmem:[%s1623_s1 + $0x84] ss:$8 sps:$4 sm:$0xff]  }
   0x8   :  { %339 = vmatpush1.bf16.msra.mxu0 %v1191_v7  ;;  %v1232_v61 = vld [vmem:[%s1624_s3 + $0x40] sm:$0xff]   ;;  %v1213_v0 = vld [vmem:[%s1623_s1 + $0x94] ss:$8 sps:$4 sm:$0xff]   ;;  %v1215_v1 = vld [vmem:[%s1623_s1 + $0x90] ss:$8 sps:$4 sm:$0xff]   ;;  %vm128_vm6 = vcmask 523264  }
   0x9   :  { %340 = vmatprep.subr.bf16.mxu0 %v1192_v8  ;;  %v1233_v62 = vld [vmem:[%s1624_s3] sm:$0xff]   ;;  %1055 = vmatprep.subr.bf16.mxu1 %v1232_v61  ;;  %v1219_v4 = vld [vmem:[%s1623_s1 + $0xb4] ss:$8 sps:$4 sm:$0xff]   ;;  %v1221_v5 = vld [vmem:[%s1623_s1 + $0xb0] ss:$8 sps:$4 sm:$0xff]   ;;  %vm118_vm7 = vcmask 785408  }
   0xa   :  { %v1212_v63 = vld [vmem:[%s1623_s1 + $0x80] ss:$8 sps:$4 sm:$0xff]   ;;  %1056 = vmatpush3.bf16.msra.mxu1 %v1233_v62  ;;  %v1216_v2 = vld [vmem:[%s1623_s1 + $0xa4] ss:$8 sps:$4 sm:$0xff]   ;;  %v1225_v8 = vld [vmem:[%s1623_s1 + $0xd4] ss:$8 sps:$4 sm:$0xff]  }
   0xb   :  { %v1218_v3 = vld [vmem:[%s1623_s1 + $0xa0] ss:$8 sps:$4 sm:$0xff]   ;;  %v1222_v6 = vld [vmem:[%s1623_s1 + $0xc4] ss:$8 sps:$4 sm:$0xff]   ;;  %vm329_vm8 = vcmask 916480   ;;  %v1238_v61 = vld [vmem:[%s1624_s3 + $0x50] sm:$0xff]  }
   0xc   :  { %v1347_v11 = vpop.eup %1271  ;;  %341 = vmatpush1.bf16.msra.mxu0 %v1194_v9  ;;  %v1224_v7 = vld [vmem:[%s1623_s1 + $0xc0] ss:$8 sps:$4 sm:$0xff]   ;;  %v1227_v9 = vld [vmem:[%s1623_s1 + $0xd0] ss:$8 sps:$4 sm:$0xff]   ;;  %vm459_vm9 = vcmask 1041408   ;;  %vm974_vm10 = vcmask 261120  }
   0xd   :  { %v1349_v12 = vpop.eup %1273  ;;  %v54_v13 = vrot.slane %v1347_v11, 2  ;;  %v34_v14 = vrot.slane %v1347_v11, 1  ;;  %v74_v15 = vrot.slane %v1347_v11, 3  ;;  %v94_v16 = vrot.slane %v1347_v11, 4  ;;  %342 = vmatprep.subr.bf16.mxu0 %v1195_v10  ;;  %v1228_v10 = vld [vmem:[%s1623_s1 + $0xe4] ss:$8 sps:$4 sm:$0xff]  }
   0xe   :  { %v1355_v17 = vpop.eup %1275  ;;  %v55_v18 = vrot.slane %v1349_v12, 2  ;;  %v35_v19 = vrot.slane %v1349_v12, 1  ;;  %v75_v20 = vrot.slane %v1349_v12, 3  ;;  %v95_v21 = vrot.slane %v1349_v12, 4  ;;  %v1239_v62 = vld [vmem:[%s1624_s3 + $0x10] sm:$0xff]  }
   0xf   :  { %v57_v23 = vrot.slane %v1355_v17, 2  ;;  %v37_v24 = vrot.slane %v1355_v17, 1  ;;  %v77_v25 = vrot.slane %v1355_v17, 3  ;;  %v97_v26 = vrot.slane %v1355_v17, 4  ;;  %v1371_v28 = vpop.eup %1277 }
  0x10   :  { %v56_v29 = vsel %vm53_vm0, %v54_v13, %v55_v18  ;;  %v36_v30 = vsel %vm33_vm1, %v34_v14, %v35_v19  ;;  %v76_v31 = vsel %vm73_vm2, %v74_v15, %v75_v20  ;;  %v96_v32 = vsel %vm93_vm3, %v94_v16, %v95_v21  ;;  %343 = vmatpush1.bf16.msra.mxu0 %v1197_v22  ;;  %v1230_v13 = vld [vmem:[%s1623_s1 + $0xe0] ss:$8 sps:$4 sm:$0xff]  }
  0x11   :  { %v58_v33 = vsel %vm53_vm0, %v55_v18, %v57_v23  ;;  %v38_v34 = vsel %vm33_vm1, %v35_v19, %v37_v24  ;;  %v78_v35 = vsel %vm73_vm2, %v75_v20, %v77_v25  ;;  %v98_v36 = vsel %vm93_vm3, %v95_v21, %v97_v26  ;;  %344 = vmatprep.subr.bf16.mxu0 %v1198_v27  ;;  %v1231_v14 = vld [vmem:[%s1624_s3 + $0x100] sm:$0xff]  }
  0x12   :  { %v1146_v37 = vpack.i.bf16 %v58_v33, %v56_v29  ;;  %v1156_v38 = vpack.i.bf16 %v38_v34, %v36_v30  ;;  %v59_v40 = vrot.slane %v1371_v28, 2  ;;  %v79_v41 = vrot.slane %v1371_v28, 3 }
  0x13   :  { %v1151_v43 = vpack.i.bf16 %v78_v35, %v76_v31  ;;  %v1161_v44 = vpack.i.bf16 %v98_v36, %v96_v32  ;;  %v39_v47 = vrot.slane %v1371_v28, 1  ;;  %v99_v48 = vrot.slane %v1371_v28, 4 }
  0x14   :  { %1147 = vrot.lane.b32.xlu0 %v1146_v37, %s1279_s22  ;;  %1157 = vrot.lane.b32.xlu1 %v1156_v38, %s1280_s23  ;;  %v60_v45 = vsel %vm53_vm0, %v57_v23, %v59_v40  ;;  %v80_v46 = vsel %vm73_vm2, %v77_v25, %v79_v41  ;;  %vm976_vm11 = vcmask 516096  }
  0x15   :  { %345 = vmatpush1.bf16.msra.mxu0 %v1200_v39  ;;  %v1166_v51 = vpack.i.bf16 %v59_v40, %v60_v45  ;;  %v1171_v52 = vpack.i.bf16 %v79_v41, %v80_v46  ;;  %v40_v53 = vsel %vm33_vm1, %v37_v24, %v39_v47  ;;  %v100_v54 = vsel %vm93_vm3, %v97_v26, %v99_v48 }
  0x16   :  { %346 = vmatprep.subr.bf16.mxu0 %v1201_v42  ;;  %v1176_v57 = vpack.i.bf16 %v39_v47, %v40_v53  ;;  %v1181_v58 = vpack.i.bf16 %v99_v48, %v100_v54 }
  0x18   :  { %1152 = vrot.lane.b32.xlu0 %v1151_v43, %s1281_s28  ;;  %1162 = vrot.lane.b32.xlu1 %v1161_v44, %s1282_s29  ;;  %v1234_v43 = vld [vmem:[%s1624_s3 + $0x108] sm:$0xff]  }
  0x19   :  { %347 = vmatpush1.bf16.msra.mxu0 %v1203_v49 }
  0x1a   :  { %348 = vmatprep.subr.bf16.mxu0 %v1204_v50 }
  0x1c   :  { %1167 = vrot.lane.b32.xlu0 %v1166_v51, %s1279_s22  ;;  %1172 = vrot.lane.b32.xlu1 %v1171_v52, %s1281_s28 }
  0x1d   :  { %349 = vmatpush1.bf16.msra.mxu0 %v1206_v55 }
  0x1e   :  { %350 = vmatprep.subr.bf16.mxu0 %v1207_v56 }
  0x20   :  { %1177 = vrot.lane.b32.xlu0 %v1176_v57, %s1280_s23  ;;  %1182 = vrot.lane.b32.xlu1 %v1181_v58, %s1282_s29 }
  0x21   :  { %351 = vmatpush1.bf16.msra.mxu0 %v1209_v59 }
  0x22   :  { %352 = vmatprep.subr.bf16.mxu0 %v1210_v60  ;;  %v1237_v60 = vld [vmem:[%s1624_s3 + $0x110] sm:$0xff]  }
  0x25   :  { %353 = vmatpush1.bf16.msra.mxu0 %v1212_v63  ;;  %v1240_v63 = vld [vmem:[%s1624_s3 + $0x118] sm:$0xff]  }
  0x26   :  { %354 = vmatprep.subr.bf16.mxu0 %v1213_v0  ;;  %v1241_v0 = vld [vmem:[%s1624_s3 + $0x58] sm:$0xff]  }
  0x29   :  { %355 = vmatpush1.bf16.msra.mxu0 %v1215_v1  ;;  %v1242_v1 = vld [vmem:[%s1624_s3 + $0x18] sm:$0xff]  }
  0x2a   :  { %356 = vmatprep.subr.bf16.mxu0 %v1216_v2  ;;  %v1243_v2 = vld [vmem:[%s1624_s3 + $0x120] sm:$0xff]  }
  0x2d   :  { %357 = vmatpush1.bf16.msra.mxu0 %v1218_v3  ;;  %v1244_v3 = vld [vmem:[%s1624_s3 + $0x60] sm:$0xff]  }
  0x2e   :  { %358 = vmatprep.subr.bf16.mxu0 %v1219_v4  ;;  %v1245_v4 = vld [vmem:[%s1624_s3 + $0x20] sm:$0xff]  }
  0x31   :  { %359 = vmatpush1.bf16.msra.mxu0 %v1221_v5  ;;  %v1246_v5 = vld [vmem:[%s1624_s3 + $0x128] sm:$0xff]  }
  0x32   :  { %360 = vmatprep.subr.bf16.mxu0 %v1222_v6  ;;  %v1247_v6 = vld [vmem:[%s1624_s3 + $0x68] sm:$0xff]  }
  0x35   :  { %361 = vmatpush1.bf16.msra.mxu0 %v1224_v7  ;;  %v1248_v7 = vld [vmem:[%s1624_s3 + $0x28] sm:$0xff]  }
  0x36   :  { %362 = vmatprep.subr.bf16.mxu0 %v1225_v8  ;;  %v1249_v8 = vld [vmem:[%s1624_s3 + $0x130] sm:$0xff]  }
  0x39   :  { %363 = vmatpush1.bf16.msra.mxu0 %v1227_v9  ;;  %v1250_v9 = vld [vmem:[%s1624_s3 + $0x70] sm:$0xff]  }
  0x3a   :  { %364 = vmatprep.subr.bf16.mxu0 %v1228_v10  ;;  %v1251_v10 = vld [vmem:[%s1624_s3 + $0x30] sm:$0xff]  }
  0x3d   :  { %365 = vmatpush1.bf16.msra.mxu0 %v1230_v13  ;;  %v1252_v13 = vld [vmem:[%s1624_s3 + $0x138] sm:$0xff]  }
  0x3e   :  { %1121 = vmatprep.subr.bf16.mxu0 %v1231_v14 }
  0x86   :  { %v1148_v15 = vpop.permute.xlu0 %1147  ;;  %v1158_v16 = vpop.permute.xlu1 %1157 }
  0x87   :  { %v1160_v18 = vunpack.i.h.bf16 %v1158_v16  ;;  %v1159_v19 = vunpack.i.l.bf16 %v1158_v16  ;;  %v1150_v20 = vunpack.i.h.bf16 %v1148_v15  ;;  %v1149_v21 = vunpack.i.l.bf16 %v1148_v15  ;;  %v1254_v15 = vld [vmem:[%s1624_s3 + $0x38] sm:$0xff]   ;;  %v1255_v16 = vld [vmem:[%s1624_s3 + $0xc0] sm:$0xff]  }
  0x89   :  { %v115_v22 = vsel %vm113_vm4, %v1349_v12, %v1160_v18  ;;  %v114_v23 = vsel %vm113_vm4, %v1347_v11, %v1159_v19  ;;  %v169_v18 = vlaneseq }
  0x8a   :  { %v1153_v24 = vpop.permute.xlu0 %1152  ;;  %v1163_v25 = vpop.permute.xlu1 %1162  ;;  %v119_v12 = vsel %vm118_vm7, %v114_v23, %v1149_v21  ;;  %v120_v11 = vsel %vm118_vm7, %v115_v22, %v1150_v20 }
  0x8b   :  { %v1155_v26 = vunpack.i.h.bf16 %v1153_v24  ;;  %v1154_v27 = vunpack.i.l.bf16 %v1153_v24  ;;  %v1165_v29 = vunpack.i.h.bf16 %v1163_v25  ;;  %v1164_v30 = vunpack.i.l.bf16 %v1163_v25 }
  0x8c   :  { %v133_v42 = vpack.c.bf16 %v120_v11, %v119_v12  ;;  %v170_v19 = vshrl.u32 %v169_v18, 7 }
  0x8d   :  { %v124_v31 = vsel %vm123_vm5, %v1149_v21, %v1154_v27  ;;  %v125_v32 = vsel %vm123_vm5, %v1150_v20, %v1155_v26  ;;  %v167_v21 = vld [vmem:[%s1625_s2] sm:$0x3] }
  0x8e   :  { %v1168_v33 = vpop.permute.xlu0 %1167  ;;  %v1173_v34 = vpop.permute.xlu1 %1172  ;;  %v129_v35 = vsel %vm128_vm6, %v124_v31, %v1164_v30  ;;  %v130_v36 = vsel %vm128_vm6, %v125_v32, %v1165_v29  ;;  %v171_v20 = vsub.s32 0, %v170_v19  ;;  %v175_v22 = vsub.s32 1, %v170_v19 }
  0x8f   :  { %v1170_v37 = vunpack.i.h.bf16 %v1168_v33  ;;  %v1169_v38 = vunpack.i.l.bf16 %v1168_v33  ;;  %v1175_v39 = vunpack.i.h.bf16 %v1173_v34  ;;  %v1174_v40 = vunpack.i.l.bf16 %v1173_v34 }
  0x90   :  { %v134_v41 = vpack.c.bf16 %v130_v36, %v129_v35  ;;  %v172_v23 = vrot.slane %v167_v21, %v171_v20  ;;  %v176_v24 = vrot.slane %v167_v21, %v175_v22 }
  0x91   :  { %v127_v50 = vsel %vm123_vm5, %v1170_v37, %v1175_v39  ;;  %v126_v51 = vsel %vm123_vm5, %v1169_v38, %v1174_v40 }
  0x92   :  { %1012 = vmatprep.mubr.msk.bf16.mxu0 %vm329_vm8, %v134_v41  ;;  %v1178_v44 = vpop.permute.xlu0 %1177  ;;  %v1183_v45 = vpop.permute.xlu1 %1182 }
  0x93   :  { %v1180_v46 = vunpack.i.h.bf16 %v1178_v44  ;;  %v1179_v47 = vunpack.i.l.bf16 %v1178_v44  ;;  %v1185_v48 = vunpack.i.h.bf16 %v1183_v45  ;;  %v1184_v49 = vunpack.i.l.bf16 %v1183_v45  ;;  %369 = vmatmul.mubr.bf16.vlgmr.msra.gmra.mrb[0].mxu0 %v133_v42 }
  0x94   :  { %1122 = vmatpush3.bf16.msra.mxu0 %v1231_v14  ;;  %v1253_v14 = vld [vmem:[%s1624_s3 + $0x78] sm:$0xff]  }
  0x95   :  { %v117_v52 = vsel %vm113_vm4, %v1371_v28, %v1180_v46  ;;  %v116_v53 = vsel %vm113_vm4, %v1355_v17, %v1179_v47  ;;  %v131_v54 = vsel %vm128_vm6, %v126_v51, %v1184_v49  ;;  %v132_v55 = vsel %vm128_vm6, %v127_v50, %v1185_v48  ;;  %1123 = vmatprep.subr.bf16.mxu0 %v1234_v43  ;;  %v1235_v28 = vld [vmem:[%s1624_s3 + $0x48] sm:$0xff]  }
  0x96   :  { %v136_v56 = vpack.c.bf16 %v132_v55, %v131_v54  ;;  %v121_v57 = vsel %vm118_vm7, %v116_v53, %v1169_v38  ;;  %v122_v58 = vsel %vm118_vm7, %v117_v52, %v1170_v37  ;;  %v1236_v17 = vld [vmem:[%s1624_s3 + $0x8] sm:$0xff]   ;;  %1057 = vmatprep.subr.bf16.mxu1 %v1235_v28 }
  0x97   :  { %v135_v59 = vpack.c.bf16 %v122_v58, %v121_v57  ;;  %1058 = vmatpush3.bf16.msra.mxu1 %v1236_v17 }
  0x98   :  { %1013 = vmatprep.mubr.msk.bf16.mxu0 %vm329_vm8, %v136_v56  ;;  %1124 = vmatpush3.bf16.msra.mxu0 %v1234_v43 }
  0x99   :  { %1125 = vmatprep.subr.bf16.mxu0 %v1237_v60  ;;  %1059 = vmatprep.subr.bf16.mxu1 %v1238_v61 }
  0x9b   :  { %379 = vmatmul.mubr.bf16.gmra.mrb[4].mxu0 %v135_v59  ;;  %1060 = vmatpush3.bf16.msra.mxu1 %v1239_v62 }
  0x9c   :  { %1126 = vmatpush3.bf16.msra.mxu0 %v1237_v60  ;;  %1061 = vmatprep.subr.bf16.mxu1 %v1241_v0 }
  0x9d   :  { %1127 = vmatprep.subr.bf16.mxu0 %v1240_v63 }
  0x9f   :  { %1062 = vmatpush3.bf16.msra.mxu1 %v1242_v1 }
  0xa0   :  { %1128 = vmatpush3.bf16.msra.mxu0 %v1240_v63  ;;  %1063 = vmatprep.subr.bf16.mxu1 %v1244_v3 }
  0xa1   :  { %1129 = vmatprep.subr.bf16.mxu0 %v1243_v2 }
  0xa3   :  { %1064 = vmatpush3.bf16.msra.mxu1 %v1245_v4 }
  0xa4   :  { %1130 = vmatpush3.bf16.msra.mxu0 %v1243_v2  ;;  %1065 = vmatprep.subr.bf16.mxu1 %v1247_v6 }
  0xa5   :  { %1131 = vmatprep.subr.bf16.mxu0 %v1246_v5 }
  0xa7   :  { %1066 = vmatpush3.bf16.msra.mxu1 %v1248_v7 }
  0xa8   :  { %1132 = vmatpush3.bf16.msra.mxu0 %v1246_v5  ;;  %1067 = vmatprep.subr.bf16.mxu1 %v1250_v9 }
  0xa9   :  { %1133 = vmatprep.subr.bf16.mxu0 %v1249_v8 }
  0xab   :  { %1068 = vmatpush3.bf16.msra.mxu1 %v1251_v10 }
  0xac   :  { %1134 = vmatpush3.bf16.msra.mxu0 %v1249_v8  ;;  %1069 = vmatprep.subr.bf16.mxu1 %v1253_v14 }
  0xad   :  { %1135 = vmatprep.subr.bf16.mxu0 %v1252_v13 }
  0xaf   :  { %1070 = vmatpush3.bf16.msra.mxu1 %v1254_v15 }
  0xb0   :  { %1136 = vmatpush3.bf16.msra.mxu0 %v1252_v13  ;;  %1083 = vmatprep.subr.bf16.mxu1 %v1255_v16 }
 0x166   :  { %v370_v25 = vpop.f32.mrb[0].mxu0 }
 0x167   :  { %v371_v26 = vadd.f32 %v370_v25, %v172_v23  ;;  %v372_v27 = vpop.f32.mrb[1].mxu0 }
 0x168   :  { %v373_v29 = vadd.f32 %v372_v27, %v176_v24  ;;  %v374_v30 = vpop.f32.mrb[2].mxu0 }
 0x169   :  { %v389_v31 = vmax.f32 %v371_v26, 0.0  ;;  %v375_v32 = vadd.f32 %v374_v30, %v172_v23  ;;  %v376_v33 = vpop.f32.mrb[3].mxu0  ;;  %v1256_v30 = vld [vmem:[%s1624_s3 + $0x80] sm:$0xff]  }
 0x16a   :  { %v390_v34 = vmax.f32 %v373_v29, 0.0  ;;  %v377_v35 = vadd.f32 %v376_v33, %v176_v24 }
 0x16b   :  { %v391_v36 = vmax.f32 %v375_v32, 0.0  ;;  %v405_v11 = vrot.slane %v389_v31, 1 }
 0x16c   :  { %v392_v12 = vmax.f32 %v377_v35, 0.0  ;;  %v408_v38 = vrot.slane %v390_v34, 1 }
 0x16d   :  { %v406_v37 = vrot.slane %v391_v36, 1 }
 0x16e   :  { %v409_v39 = vrot.slane %v392_v12, 1  ;;  %v380_v40 = vpop.f32.mrb[4].mxu0 }
 0x16f   :  { %v407_v41 = vsel %vm33_vm1, %v405_v11, %v406_v37  ;;  %v381_v42 = vadd.f32 %v380_v40, %v172_v23  ;;  %v382_v43 = vpop.f32.mrb[5].mxu0  ;;  %v1258_v11 = vld [vmem:[%s1624_s3 + $0x88] sm:$0xff]   ;;  %v1261_v40 = vld [vmem:[%s1624_s3 + $0xd8] sm:$0xff]  }
 0x170   :  { %v427_v44 = vmax.f32 %v389_v31, %v407_v41  ;;  %v410_v45 = vsel %vm33_vm1, %v408_v38, %v409_v39  ;;  %v383_v46 = vadd.f32 %v382_v43, %v176_v24  ;;  %v384_v47 = vpop.f32.mrb[6].mxu0  ;;  %v1260_v38 = vld [vmem:[%s1624_s3 + $0x90] sm:$0xff]   ;;  %v1262_v41 = vld [vmem:[%s1624_s3 + $0x98] sm:$0xff]   ;;  %v1264_v43 = vld [vmem:[%s1624_s3 + $0xa0] sm:$0xff]  }
 0x171   :  { %v428_v48 = vmax.f32 %v390_v34, %v410_v45  ;;  %v393_v49 = vmax.f32 %v381_v42, 0.0  ;;  %v385_v50 = vadd.f32 %v384_v47, %v172_v23  ;;  %v386_v51 = vpop.f32.mrb[7].mxu0  ;;  %v1257_v34 = vld [vmem:[%s1624_s3 + $0xc8] sm:$0xff]   ;;  %v1263_v42 = vld [vmem:[%s1624_s3 + $0xe0] sm:$0xff]   ;;  %v1268_v47 = vld [vmem:[%s1624_s3 + $0xb0] sm:$0xff]  }
 0x172   :  { %v394_v52 = vmax.f32 %v383_v46, 0.0  ;;  %v387_v53 = vadd.f32 %v386_v51, %v176_v24  ;;  %v1266_v45 = vld [vmem:[%s1624_s3 + $0xa8] sm:$0xff]   ;;  %v1267_v46 = vld [vmem:[%s1624_s3 + $0xf0] sm:$0xff]  }
 0x173   :  { %v435_v54 = vmax.f32 %v427_v44, %v428_v48  ;;  %v411_v55 = vrot.slane %v393_v49, 1  ;;  %v395_v56 = vmax.f32 %v385_v50, 0.0  ;;  %v1265_v44 = vld [vmem:[%s1624_s3 + $0xe8] sm:$0xff]   ;;  %v1269_v48 = vld [vmem:[%s1624_s3 + $0xf8] sm:$0xff]  }
 0x174   :  { %v413_v57 = vrot.slane %v394_v52, 1  ;;  %v396_v58 = vmax.f32 %v387_v53, 0.0 }
 0x175   :  { %v412_v59 = vsel %vm33_vm1, %v406_v37, %v411_v55  ;;  %v415_v28 = vrot.slane %v395_v56, 1  ;;  %v442_v7 = vrot.slane %v435_v54, 2  ;;  %v460_v15 = vrot.slane %v435_v54, 6  ;;  %v1259_v37 = vld [vmem:[%s1624_s3 + $0xd0] sm:$0xff]  }
 0x176   :  { %v429_v17 = vmax.f32 %v391_v36, %v412_v59  ;;  %v414_v60 = vsel %vm33_vm1, %v409_v39, %v413_v57  ;;  %v417_v61 = vrot.slane %v396_v58, 1  ;;  %v450_v16 = vrot.slane %v435_v54, 4 }
 0x177   :  { %v430_v62 = vmax.f32 %v392_v12, %v414_v60  ;;  %v416_v63 = vsel %vm33_vm1, %v411_v55, %v415_v28  ;;  %v433_v0 = vmax.f32 %v395_v56, %v415_v28 }
 0x178   :  { %v431_v1 = vmax.f32 %v393_v49, %v416_v63  ;;  %v418_v2 = vsel %vm33_vm1, %v413_v57, %v417_v61  ;;  %v434_v3 = vmax.f32 %v396_v58, %v417_v61  ;;  %v1270_v49 = vld [vmem:[%s1624_s3 + $0xb8] sm:$0xff]  }
 0x179   :  { %v436_v4 = vmax.f32 %v429_v17, %v430_v62  ;;  %v432_v5 = vmax.f32 %v394_v52, %v418_v2 }
 0x17a   :  { %v438_v6 = vmax.f32 %v433_v0, %v434_v3  ;;  %v1014_v0 = vld [vmem:[%s1626_s4] ss:$0 sm:$0xff]  ;;  %s1283_s4 = smov 32  }
 0x17b   :  { %v437_v8 = vmax.f32 %v431_v1, %v432_v5  ;;  %v443_v9 = vrot.slane %v436_v4, 2  ;;  %v470_v10 = vpack.c.bf16 %v436_v4, %v435_v54  ;;  %v461_v13 = vrot.slane %v436_v4, 6 }
 0x17c   :  { %v465_v14 = vrot.slane %v438_v6, 6  ;;  %v451_v18 = vrot.slane %v436_v4, 4  ;;  %v479_v19 = vpack.c.bf16 %v438_v6, %v438_v6 }
 0x17d   :  { %v474_v20 = vpack.c.bf16 %v437_v8, %v436_v4  ;;  %v444_v21 = vsel %vm53_vm0, %v442_v7, %v443_v9  ;;  %v445_v22 = vrot.slane %v437_v8, 2  ;;  %v462_v23 = vsel %vm459_vm9, %v460_v15, %v461_v13 }
 0x17e   :  { %v463_v24 = vrot.slane %v437_v8, 6  ;;  %v452_v25 = vsel %vm93_vm3, %v450_v16, %v451_v18  ;;  %v453_v26 = vrot.slane %v437_v8, 4  ;;  %v475_v39 = vpack.c.bf16 %v437_v8, %v437_v8 }
 0x17f   :  { %1137 = vmatprep.mubr.bf16.mxu0 %v474_v20  ;;  %v446_v27 = vsel %vm53_vm0, %v443_v9, %v445_v22  ;;  %v476_v12 = vpack.c.bf16 %v445_v22, %v445_v22 }
 0x180   :  { %1138 = vmatmul.mubr.bf16.vlgmr.msra.gmra.mrb[8].mxu0 %v479_v19  ;;  %v471_v29 = vpack.c.bf16 %v446_v27, %v444_v21  ;;  %v464_v31 = vsel %vm459_vm9, %v461_v13, %v463_v24  ;;  %v454_v32 = vsel %vm93_vm3, %v451_v18, %v453_v26  ;;  %v466_v33 = vsel %vm459_vm9, %v463_v24, %v465_v14 }
 0x181   :  { %v473_v35 = vpack.c.bf16 %v464_v31, %v462_v23  ;;  %v472_v36 = vpack.c.bf16 %v454_v32, %v452_v25  ;;  %v478_v50 = vpack.c.bf16 %v466_v33, %v466_v33  ;;  %v477_v51 = vpack.c.bf16 %v453_v26, %v453_v26 }
 0x182   :  { %839 = vmatprep.mubr.bf16.mxu1 %v471_v29 }
 0x183   :  { %840 = vmatmul.mubr.bf16.vlgmr.msra.gmra.mrb[0].mxu1 %v470_v10 }
 0x184   :  { %1084 = vmatpush3.bf16.msra.mxu1 %v1256_v30  ;;  %846 = vmatprep.mubr.bf16.mxu1 %v476_v12 }
 0x185   :  { %1085 = vmatprep.subr.bf16.mxu1 %v1257_v34 }
 0x188   :  { %1086 = vmatpush3.bf16.msra.mxu1 %v1258_v11 }
 0x189   :  { %1087 = vmatprep.subr.bf16.mxu1 %v1259_v37 }
 0x18b   :  { %847 = vmatmul.mubr.bf16.gmra.mrb[4].mxu1 %v475_v39 }
 0x18c   :  { %1088 = vmatpush3.bf16.msra.mxu1 %v1260_v38  ;;  %886 = vmatprep.mubr.bf16.mxu1 %v473_v35 }
 0x18d   :  { %1089 = vmatprep.subr.bf16.mxu1 %v1261_v40 }
 0x190   :  { %1090 = vmatpush3.bf16.msra.mxu1 %v1262_v41 }
 0x191   :  { %1091 = vmatprep.subr.bf16.mxu1 %v1263_v42 }
 0x194   :  { %1092 = vmatpush3.bf16.msra.mxu1 %v1264_v43 }
 0x195   :  { %1093 = vmatprep.subr.bf16.mxu1 %v1265_v44 }
 0x198   :  { %1094 = vmatpush3.bf16.msra.mxu1 %v1266_v45 }
 0x199   :  { %1095 = vmatprep.subr.bf16.mxu1 %v1267_v46 }
 0x19c   :  { %1096 = vmatpush3.bf16.msra.mxu1 %v1268_v47 }
 0x19d   :  { %1097 = vmatprep.subr.bf16.mxu1 %v1269_v48 }
 0x1a0   :  { %1098 = vmatpush3.bf16.msra.mxu1 %v1270_v49 }
 0x1a3   :  { %887 = vmatmul.mubr.bf16.vlgmr.msra.gmra.mrb[8].mxu1 %v472_v36 }
 0x1a4   :  { %893 = vmatprep.mubr.bf16.mxu1 %v478_v50 }
 0x1ab   :  { %894 = vmatmul.mubr.bf16.gmra.mrb[12].mxu1 %v477_v51 }
 0x253   :  { %v1139_v52 = vpop.f32.mrb[8].mxu0 }
 0x254   :  { %v935_v53 = vpop.f32.mrb[9].mxu0 }
 0x255   :  { %v1140_v54 = vpop.f32.mrb[10].mxu0 }
 0x256   :  { %v1071_v55 = vpop.f32.mrb[0].mxu1  ;;  %v938_v56 = vpop.f32.mrb[11].mxu0 }
 0x257   :  { %v1072_v57 = vpop.f32.mrb[1].mxu1 }
 0x258   :  { %v1073_v58 = vadd.f32 %v1072_v57, %v1071_v55  ;;  %v1074_v59 = vpop.f32.mrb[2].mxu1 }
 0x259   :  { %v1075_v28 = vpop.f32.mrb[3].mxu1 }
 0x25a   :  { %v842_v3 = vadd.f32 %v1073_v58, %v1014_v0 }
 0x25e   :  { %v1077_v17 = vpop.f32.mrb[4].mxu1 }
 0x25f   :  { %v1078_v60 = vpop.f32.mrb[5].mxu1 }
 0x260   :  { %v1079_v61 = vadd.f32 %v1078_v60, %v1077_v17  ;;  %v1080_v62 = vpop.f32.mrb[6].mxu1 }
 0x261   :  { %v1081_v63 = vpop.f32.mrb[7].mxu1 }
 0x262   :  { %v849_v14 = vadd.f32 %v1079_v61, %v1014_v0 }
 0x276   :  { %v1099_v1 = vpop.f32.mrb[8].mxu1 }
 0x277   :  { %v1100_v2 = vpop.f32.mrb[9].mxu1 }
 0x278   :  { %v1101_v4 = vadd.f32 %v1100_v2, %v1099_v1  ;;  %v1102_v5 = vpop.f32.mrb[10].mxu1 }
 0x279   :  { %v1103_v6 = vpop.f32.mrb[11].mxu1 }
 0x27a   :  { %v889_v7 = vadd.f32 %v1101_v4, %v842_v3 }
 0x27c   :  { %v936_v8 = vadd.f32 %v935_v53, %v889_v7 }
 0x27e   :  { %v948_v9 = vmax.f32 %v936_v8, 0.0  ;;  %v1105_v10 = vpop.f32.mrb[12].mxu1 }
 0x27f   :  { %v1106_v13 = vpop.f32.mrb[13].mxu1 }
 0x280   :  { %v1107_v15 = vadd.f32 %v1106_v13, %v1105_v10  ;;  %v1108_v16 = vpop.f32.mrb[14].mxu1  ;;  %v951_v18 = vrot.slane %v948_v9, 2 }
 0x281   :  { %v1109_v19 = vpop.f32.mrb[15].mxu1 }
 0x282   :  { %v896_v20 = vadd.f32 %v1107_v15, %v849_v14  ;;  %v953_v21 = vmax.f32 %v948_v9, %v951_v18 }
 0x284   :  { %v943_v22 = vadd.f32 %v1139_v52, %v896_v20  ;;  %955 = vrot.lane.b32.xlu1 %v953_v21, %s1279_s22 }
 0x286   :  { %v949_v23 = vmax.f32 %v943_v22, 0.0 }
 0x288   :  { %v961_v24 = vrot.slane %v949_v23, 2 }
 0x28a   :  { %v963_v25 = vmax.f32 %v949_v23, %v961_v24 }
 0x28c   :  { %965 = vrot.lane.b32.xlu0 %v963_v25, %s1279_s22 }
 0x2f6   :  { %v956_v30 = vpop.permute.xlu1 %955 }
 0x2f7   :  { %v958_v31 = vmax.f32 %v953_v21, %v956_v30 }
 0x2f9   :  { %v959_v32 = vmax.f32 %v958_v31, 0.0 }
 0x2fe   :  { %v966_v26 = vpop.permute.xlu0 %965 }
 0x2ff   :  { %v968_v27 = vmax.f32 %v963_v25, %v966_v26 }
 0x301   :  { %v969_v29 = vmax.f32 %v968_v27, 0.0 }
 0x303   :  { %971 = vrot.lane.b32.xlu0 %v969_v29, %s1283_s4 }
 0x375   :  { %v972_v33 = vpop.permute.xlu0 %971 }
 0x376   :  { %v975_v34 = vsel %vm974_vm10, %v959_v32, %v972_v33 }
 0x377   :  { %977 = vst.msk [vmem:[%s1627_s5] sm:$0x1] %vm976_vm11, %v975_v34 }

</bundles_post_ra>
